<compile_context>
chip_gen: v7x
topology: tpu7x:2x2x1
jax: 0.10.0
libtpu: 0.0.40
codegen_flags: <defaults>
</compile_context>

<pallas_src>
import jax
import jax.numpy as jnp
from jax.experimental import pallas as pl
from jax.experimental.pallas import tpu as pltpu


def icnn_kernel(xcol_ref, elem_ref, wcol_ref, cb_ref, w1a_ref, w1b_ref, b1_ref,
                w2_ref, b2_ref, out_ref):
    # xcol_ref: (TB, F, K*Ci)  im2col patches        wcol_ref: (K*Ci, C)
    # elem_ref: (TB, Le)                              cb_ref:   (1, C)
    # w1a_ref:  (Le, H)   w1b_ref: (C, H)             b1_ref:   (1, H)
    # w2_ref:   (H, NCp)  b2_ref:  (1, NCp)           out_ref:  (TB, NCp)
    TB, F, KCi = xcol_ref.shape
    C = wcol_ref.shape[1]

    # --- Conv1d + ReLU + full-width MaxPool, as one MXU matmul ---
    x2 = xcol_ref[...].reshape(TB * F, KCi)                       # sublane-merge only
    conv = jnp.dot(x2, wcol_ref[...], preferred_element_type=jnp.float32)
    conv = conv.reshape(TB, F, C) + cb_ref[...]                   # (1,C) broadcasts
    conv = jnp.maximum(conv, 0.0)
    pooled = jnp.max(conv, axis=1)                                # MaxPool1d(F) -> (TB, C)

    # --- hidden = ReLU(cat(elements, pooled) @ W1^T + b1); W1 pre-split -> no concat ---
    h = (jnp.dot(elem_ref[...], w1a_ref[...], preferred_element_type=jnp.float32)
         + jnp.dot(pooled, w1b_ref[...], preferred_element_type=jnp.float32)
         + b1_ref[...])
    h = jnp.maximum(h, 0.0)                                       # (TB, H)

    # --- out = hidden @ W2^T + b2 (num_classes padded to full lanes) ---
    out_ref[...] = (jnp.dot(h, w2_ref[...], preferred_element_type=jnp.float32)
                    + b2_ref[...]).astype(out_ref.dtype)


def icnn_forward(elements, non_elements, params, *, tb=None):
    """elements: (B, Le) f32; non_elements: (B, 4, L) f32 (PyTorch NCL)."""
    conv_w, conv_b, w1, b1, w2, b2 = params          # PyTorch-convention shapes
    B, Le = elements.shape
    _, Ci, L = non_elements.shape
    C, _, K = conv_w.shape
    F = L - K + 1
    H = w1.shape[0]
    NC = w2.shape[0]

    # ---------- Layout plumbing in plain JAX (no compute) ----------
    # Batch tile: multiple of 8 (f32 sublane), large enough to amortize grid-step
    # overhead; weights stay resident so only row-blocks stream through the pipeline.
    if tb is None:
        tb = min(max(B, 8), 256)
    tb = -(-tb // 8) * 8
    n_blk = -(-B // tb)                              # cdiv
    Bp = n_blk * tb

    # im2col: X_col[b, f, k*Ci + i] = non_elements[b, i, f + k]
    x_t = jnp.transpose(non_elements, (0, 2, 1))                  # (B, L, Ci)
    x_col = jnp.stack([x_t[:, k:k + F, :] for k in range(K)], axis=2)   # (B, F, K, Ci)
    x_col = x_col.reshape(B, F, K * Ci)

    elements_p = elements
    if Bp != B:
        x_col = jnp.pad(x_col, ((0, Bp - B), (0, 0), (0, 0)))
        elements_p = jnp.pad(elements, ((0, Bp - B), (0, 0)))

    # W_col[k*Ci + i, c] = conv_w[c, i, k]   (matches X_col's (k, i) flattening)
    w_col = jnp.transpose(conv_w, (2, 1, 0)).reshape(K * Ci, C)
    cb2 = conv_b.reshape(1, C)
    w1a = jnp.transpose(w1[:, :Le])                               # (Le, H)
    w1b = jnp.transpose(w1[:, Le:])                               # (C, H)
    b1_2 = b1.reshape(1, H)

    # Lane-dense output: pad num_classes up to 128 lanes with zeros; slice back after.
    NCp = -(-NC // 128) * 128
    w2p = jnp.pad(jnp.transpose(w2), ((0, 0), (0, NCp - NC)))     # (H, NCp)
    b2p = jnp.pad(b2.reshape(1, NC), ((0, 0), (0, NCp - NC)))     # (1, NCp)

    out = pl.pallas_call(
        icnn_kernel,
        out_shape=jax.ShapeDtypeStruct((Bp, NCp), jnp.float32),
        grid=(n_blk,),
        in_specs=[
            pl.BlockSpec((tb, F, K * Ci), lambda i: (i, 0, 0)),   # streamed per batch block
            pl.BlockSpec((tb, Le), lambda i: (i, 0)),             # streamed per batch block
            pl.BlockSpec((K * Ci, C), lambda i: (0, 0)),          # weights: VMEM-resident
            pl.BlockSpec((1, C), lambda i: (0, 0)),
            pl.BlockSpec((Le, H), lambda i: (0, 0)),
            pl.BlockSpec((C, H), lambda i: (0, 0)),
            pl.BlockSpec((1, H), lambda i: (0, 0)),
            pl.BlockSpec((H, NCp), lambda i: (0, 0)),
            pl.BlockSpec((1, NCp), lambda i: (0, 0)),
        ],
        out_specs=pl.BlockSpec((tb, NCp), lambda i: (i, 0)),
        compiler_params=pltpu.CompilerParams(
            dimension_semantics=("parallel",)),                   # megacore-shardable on v7x
    )(x_col, elements_p, w_col, cb2, w1a, w1b, b1_2, w2p, b2p)

    out = out[:B, :NC]
    # .squeeze(dim=-1) semantics from the PyTorch module:
    if NC == 1:
        out = out[:, 0]
    return out


def ref_forward(elements, non_elements, params):
    """Pure-JAX reference matching PyTorch semantics exactly."""
    conv_w, conv_b, w1, b1, w2, b2 = params
    C, Ci, K = conv_w.shape
    B, _, L = non_elements.shape
    F = L - K + 1
    conv = jnp.zeros((B, C, F), jnp.float32)
    for k in range(K):
        conv = conv + jnp.einsum('bil,ci->bcl',
                                 non_elements[:, :, k:k + F], conv_w[:, :, k])
    conv = jnp.maximum(conv + conv_b[None, :, None], 0.0)
    pooled = jnp.max(conv, axis=-1)                               # MaxPool1d(F).squeeze(-1)
    feat = jnp.concatenate([elements, pooled], axis=1)
    h = jnp.maximum(feat @ w1.T + b1, 0.0)
    out = h @ w2.T + b2
    if out.shape[-1] == 1:
        out = out[..., 0]
    return out


def init_params(key, num_classes, elements_length, num_channels, num_hidden,
                conv_kernel):
    ks = jax.random.split(key, 6)
    def u(k, shape, fan_in):
        bound = 1.0 / jnp.sqrt(fan_in)
        return jax.random.uniform(k, shape, jnp.float32, -bound, bound)
    Ci = 4
    conv_w = u(ks[0], (num_channels, Ci, conv_kernel), Ci * conv_kernel)
    conv_b = u(ks[1], (num_channels,), Ci * conv_kernel)
    in1 = elements_length + num_channels
    w1 = u(ks[2], (num_hidden, in1), in1)
    b1 = u(ks[3], (num_hidden,), in1)
    w2 = u(ks[4], (num_classes, num_hidden), num_hidden)
    b2 = u(ks[5], (num_classes,), num_hidden)
    return conv_w, conv_b, w1, b1, w2, b2


if __name__ == "__main__":
    # Small shapes consistent with the module's constructor.
    B = 8
    num_classes = 8
    elements_length = 16
    non_elements_length = 40
    num_channels = 32
    num_hidden = 128
    conv_kernel = 9     # feature_map = 40 - 9 + 1 = 32

    key = jax.random.PRNGKey(0)
    k_param, k_elem, k_ne = jax.random.split(key, 3)
    params = init_params(k_param, num_classes, elements_length, num_channels,
                         num_hidden, conv_kernel)

    elements = jax.random.normal(k_elem, (B, elements_length), jnp.float32)
    non_elements = jax.random.normal(k_ne, (B, 4, non_elements_length), jnp.float32)

    # TODO(synk): the PyTorch forward's `len(x[1].shape) == 1` packed-tuple branch is
    # input-dispatch glue; only the standard (elements, non_elements) path is implemented.

    out = icnn_forward(elements, non_elements, params)
    out = jax.block_until_ready(out)

    ref = ref_forward(elements, non_elements, params)
    assert out.shape == ref.shape
    assert jnp.allclose(out, ref, atol=1e-4, rtol=1e-4), \
        f"max abs err {jnp.max(jnp.abs(out - ref))}"

    print("KERNEL_OK")
</pallas_src>

<mosaic_0001>
module attributes {stable_mosaic.version = 11 : i64} {
  func.func @icnn_kernel(%arg0: i32, %arg1: memref<8x32x36xf32, #tpu.memory_space<vmem>>, %arg2: memref<8x16xf32, #tpu.memory_space<vmem>>, %arg3: memref<36x32xf32, #tpu.memory_space<vmem>>, %arg4: memref<1x32xf32, #tpu.memory_space<vmem>>, %arg5: memref<16x128xf32, #tpu.memory_space<vmem>>, %arg6: memref<32x128xf32, #tpu.memory_space<vmem>>, %arg7: memref<1x128xf32, #tpu.memory_space<vmem>>, %arg8: memref<128x128xf32, #tpu.memory_space<vmem>>, %arg9: memref<1x128xf32, #tpu.memory_space<vmem>>, %arg10: memref<8x128xf32, #tpu.memory_space<vmem>>) attributes {dimension_semantics = [#tpu.dimension_semantics<parallel>], iteration_bounds = array<i64: 1>, scalar_prefetch = 0 : i64, scratch_operands = 0 : i64, tpu.core_type = #tpu.core_type<tc>, window_params = [{transform_indices = @transform_0, window_bounds = array<i64: 8, 32, 36>}, {transform_indices = @transform_1, window_bounds = array<i64: 8, 16>}, {pipeline_mode = #tpu.pipeline_mode<synchronous>, transform_indices = @transform_2, window_bounds = array<i64: 36, 32>}, {pipeline_mode = #tpu.pipeline_mode<synchronous>, transform_indices = @transform_3, window_bounds = array<i64: 1, 32>}, {pipeline_mode = #tpu.pipeline_mode<synchronous>, transform_indices = @transform_4, window_bounds = array<i64: 16, 128>}, {pipeline_mode = #tpu.pipeline_mode<synchronous>, transform_indices = @transform_5, window_bounds = array<i64: 32, 128>}, {pipeline_mode = #tpu.pipeline_mode<synchronous>, transform_indices = @transform_6, window_bounds = array<i64: 1, 128>}, {pipeline_mode = #tpu.pipeline_mode<synchronous>, transform_indices = @transform_7, window_bounds = array<i64: 128, 128>}, {pipeline_mode = #tpu.pipeline_mode<synchronous>, transform_indices = @transform_8, window_bounds = array<i64: 1, 128>}, {transform_indices = @transform_9, window_bounds = array<i64: 8, 128>}]} {
    %c0 = arith.constant 0 : index
    %c0_0 = arith.constant 0 : index
    %c0_1 = arith.constant 0 : index
    %0 = vector.load %arg1[%c0, %c0_0, %c0_1] : memref<8x32x36xf32, #tpu.memory_space<vmem>>, vector<8x32x36xf32>
    %1 = vector.shape_cast %0 : vector<8x32x36xf32> to vector<256x36xf32>
    %c0_2 = arith.constant 0 : index
    %c0_3 = arith.constant 0 : index
    %2 = vector.load %arg3[%c0_2, %c0_3] : memref<36x32xf32, #tpu.memory_space<vmem>>, vector<36x32xf32>
    %cst = arith.constant dense<0.000000e+00> : vector<256x32xf32>
    %3 = tpu.matmul %1, %2, %cst {dimension_numbers = #tpu.dot_dimension_numbers<[1], [0], [0], [1], [0, 0, 1, 1], [], []>} : vector<256x36xf32>, vector<36x32xf32>, vector<256x32xf32> -> vector<256x32xf32>
    %4 = vector.shape_cast %3 : vector<256x32xf32> to vector<8x32x32xf32>
    %c0_4 = arith.constant 0 : index
    %c0_5 = arith.constant 0 : index
    %5 = vector.load %arg4[%c0_4, %c0_5] : memref<1x32xf32, #tpu.memory_space<vmem>>, vector<1x32xf32>
    %6 = vector.shape_cast %5 : vector<1x32xf32> to vector<1x1x32xf32>
    %7 = vector.broadcast %6 : vector<1x1x32xf32> to vector<8x32x32xf32>
    %8 = arith.addf %4, %7 : vector<8x32x32xf32>
    %cst_6 = arith.constant 0.000000e+00 : f32
    %9 = vector.broadcast %cst_6 : f32 to vector<8x32x32xf32>
    %10 = arith.maximumf %8, %9 : vector<8x32x32xf32>
    %cst_7 = arith.constant dense<0xFF800000> : vector<8x32xf32>
    %11 = vector.multi_reduction <maximumf>, %10, %cst_7 [1] : vector<8x32x32xf32> to vector<8x32xf32>
    %c0_8 = arith.constant 0 : index
    %c0_9 = arith.constant 0 : index
    %12 = vector.load %arg2[%c0_8, %c0_9] : memref<8x16xf32, #tpu.memory_space<vmem>>, vector<8x16xf32>
    %c0_10 = arith.constant 0 : index
    %c0_11 = arith.constant 0 : index
    %13 = vector.load %arg5[%c0_10, %c0_11] : memref<16x128xf32, #tpu.memory_space<vmem>>, vector<16x128xf32>
    %cst_12 = arith.constant dense<0.000000e+00> : vector<8x128xf32>
    %14 = tpu.matmul %12, %13, %cst_12 {dimension_numbers = #tpu.dot_dimension_numbers<[1], [0], [0], [1], [0, 0, 1, 1], [], []>} : vector<8x16xf32>, vector<16x128xf32>, vector<8x128xf32> -> vector<8x128xf32>
    %c0_13 = arith.constant 0 : index
    %c0_14 = arith.constant 0 : index
    %15 = vector.load %arg6[%c0_13, %c0_14] : memref<32x128xf32, #tpu.memory_space<vmem>>, vector<32x128xf32>
    %cst_15 = arith.constant dense<0.000000e+00> : vector<8x128xf32>
    %16 = tpu.matmul %11, %15, %cst_15 {dimension_numbers = #tpu.dot_dimension_numbers<[1], [0], [0], [1], [0, 0, 1, 1], [], []>} : vector<8x32xf32>, vector<32x128xf32>, vector<8x128xf32> -> vector<8x128xf32>
    %17 = arith.addf %14, %16 : vector<8x128xf32>
    %c0_16 = arith.constant 0 : index
    %c0_17 = arith.constant 0 : index
    %18 = vector.load %arg7[%c0_16, %c0_17] : memref<1x128xf32, #tpu.memory_space<vmem>>, vector<1x128xf32>
    %19 = vector.broadcast %18 : vector<1x128xf32> to vector<8x128xf32>
    %20 = arith.addf %17, %19 : vector<8x128xf32>
    %cst_18 = arith.constant 0.000000e+00 : f32
    %21 = vector.broadcast %cst_18 : f32 to vector<8x128xf32>
    %22 = arith.maximumf %20, %21 : vector<8x128xf32>
    %c0_19 = arith.constant 0 : index
    %c0_20 = arith.constant 0 : index
    %23 = vector.load %arg8[%c0_19, %c0_20] : memref<128x128xf32, #tpu.memory_space<vmem>>, vector<128x128xf32>
    %cst_21 = arith.constant dense<0.000000e+00> : vector<8x128xf32>
    %24 = tpu.matmul %22, %23, %cst_21 {dimension_numbers = #tpu.dot_dimension_numbers<[1], [0], [0], [1], [0, 0, 1, 1], [], []>} : vector<8x128xf32>, vector<128x128xf32>, vector<8x128xf32> -> vector<8x128xf32>
    %c0_22 = arith.constant 0 : index
    %c0_23 = arith.constant 0 : index
    %25 = vector.load %arg9[%c0_22, %c0_23] : memref<1x128xf32, #tpu.memory_space<vmem>>, vector<1x128xf32>
    %26 = vector.broadcast %25 : vector<1x128xf32> to vector<8x128xf32>
    %27 = arith.addf %24, %26 : vector<8x128xf32>
    %c0_24 = arith.constant 0 : index
    %c0_25 = arith.constant 0 : index
    %28 = vector.load %arg10[%c0_24, %c0_25] : memref<8x128xf32, #tpu.memory_space<vmem>>, vector<8x128xf32>
    tpu.vector_store %arg10[%c0_24, %c0_25], %27 {strides = array<i32>} : memref<8x128xf32, #tpu.memory_space<vmem>>, vector<8x128xf32>,
    return
  }
  func.func @transform_0(%arg0: i32) -> (i32, i32, i32) {
    %c0_i32 = arith.constant 0 : i32
    %c0_i32_0 = arith.constant 0 : i32
    %c0_i32_1 = arith.constant 0 : i32
    return %arg0, %c0_i32, %c0_i32_0 : i32, i32, i32
  }
  func.func @transform_1(%arg0: i32) -> (i32, i32) {
    %c0_i32 = arith.constant 0 : i32
    %c0_i32_0 = arith.constant 0 : i32
    return %arg0, %c0_i32 : i32, i32
  }
  func.func @transform_2(%arg0: i32) -> (i32, i32) {
    %c0_i32 = arith.constant 0 : i32
    %c0_i32_0 = arith.constant 0 : i32
    %c0_i32_1 = arith.constant 0 : i32
    return %c0_i32, %c0_i32_0 : i32, i32
  }
  func.func @transform_3(%arg0: i32) -> (i32, i32) {
    %c0_i32 = arith.constant 0 : i32
    %c0_i32_0 = arith.constant 0 : i32
    %c0_i32_1 = arith.constant 0 : i32
    return %c0_i32, %c0_i32_0 : i32, i32
  }
  func.func @transform_4(%arg0: i32) -> (i32, i32) {
    %c0_i32 = arith.constant 0 : i32
    %c0_i32_0 = arith.constant 0 : i32
    %c0_i32_1 = arith.constant 0 : i32
    return %c0_i32, %c0_i32_0 : i32, i32
  }
  func.func @transform_5(%arg0: i32) -> (i32, i32) {
    %c0_i32 = arith.constant 0 : i32
    %c0_i32_0 = arith.constant 0 : i32
    %c0_i32_1 = arith.constant 0 : i32
    return %c0_i32, %c0_i32_0 : i32, i32
  }
  func.func @transform_6(%arg0: i32) -> (i32, i32) {
    %c0_i32 = arith.constant 0 : i32
    %c0_i32_0 = arith.constant 0 : i32
    %c0_i32_1 = arith.constant 0 : i32
    return %c0_i32, %c0_i32_0 : i32, i32
  }
  func.func @transform_7(%arg0: i32) -> (i32, i32) {
    %c0_i32 = arith.constant 0 : i32
    %c0_i32_0 = arith.constant 0 : i32
    %c0_i32_1 = arith.constant 0 : i32
    return %c0_i32, %c0_i32_0 : i32, i32
  }
  func.func @transform_8(%arg0: i32) -> (i32, i32) {
    %c0_i32 = arith.constant 0 : i32
    %c0_i32_0 = arith.constant 0 : i32
    %c0_i32_1 = arith.constant 0 : i32
    return %c0_i32, %c0_i32_0 : i32, i32
  }
  func.func @transform_9(%arg0: i32) -> (i32, i32) {
    %c0_i32 = arith.constant 0 : i32
    %c0_i32_0 = arith.constant 0 : i32
    return %arg0, %c0_i32 : i32, i32
  }
}

</mosaic_0001>

<bundles_post_ra>
// kernel: tpu_custom_call.1
= control target key start
LH: loop header
LB: loop body
LE: loop exit
PB: predicated region body
PF: predicated region fallthrough
CT: control target
= control target key end

     0   :  { %14 = vsyncpa [#allocation3], 0  ;;  %s1497_s0 = inlined_call_operand.hbm [shape: f32[8,32,36], index: 0, kind: input, shape index: {}]   ;;  %s1498_s1 = inlined_call_operand.vmem [shape: f32[8,16], index: 1, kind: input, shape index: {}]   ;;  %s1499_s2 = inlined_call_operand.vmem [shape: f32[36,32], index: 2, kind: input, shape index: {}]   ;;  %s1500_s3 = inlined_call_operand.vmem [shape: f32[1,32], index: 3, kind: input, shape index: {}]   ;;  %s1501_s4 = inlined_call_operand.vmem [shape: f32[16,128], index: 4, kind: input, shape index: {}]   ;;  %s1502_s5 = inlined_call_operand.vmem [shape: f32[32,128], index: 5, kind: input, shape index: {}]   ;;  %s1503_s6 = inlined_call_operand.vmem [shape: f32[1,128], index: 6, kind: input, shape index: {}]   ;;  %s1504_s7 = inlined_call_operand.hbm [shape: f32[128,128], index: 7, kind: input, shape index: {}]   ;;  %s1505_s8 = inlined_call_operand.vmem [shape: f32[1,128], index: 8, kind: input, shape index: {}]   ;;  %s1506_s9 = inlined_call_operand.hbm [shape: f32[8,128], index: 9, kind: output, shape index: {}]  }
   0x1   :  { %15 = vsyncpa [#allocation6], 0 }
   0x2   :  { %16 = vsyncpa [#allocation4], 0  ;;  %s1232_s30 = smov [#allocation2]   ;;  %s1160_s13 = scalar_lea.hbm %s1497_s0, 4096 }
   0x3   :  { %s22_s10 = sshll.u32 %s1232_s30, 4  ;;  %p1161_p0 = scmp.ne.s32.totalorder %s1497_s0, %s1160_s13  ;;  %s23_s10 = int_to_ptr.vmem [resolvable:$true] %s22_s10 }
   0x4   :  { %p1164_p1 = scmp.lt.u32.totalorder %s1160_s13, %s1497_s0 }
   0x6   :  { %p1166_p2 = pnand %p1164_p1, %p1161_p0 }
   0x8   :  { %1169 = shalt.err (!%p1166_p2)
}
   0x9   :  { %s1170_s18 = scalar_lea.vmem %s23_s10, 4096  ;;  %p1175_p4 = scmp.lt.s32.totalorder %s23_s10, %s23_s10 }
   0xa   :  { %p1171_p3 = scmp.ne.s32.totalorder %s23_s10, %s1170_s18  ;;  %p1176_p5 = scmp.lt.s32.totalorder %s1170_s18, %s1170_s18 }
   0xc   :  { %p1177_p6 = por %p1176_p5, %p1175_p4 }
   0xe   :  { %p1178_p7 = pnand %p1177_p6, %p1171_p3 }
  0x10   :  { %1181 = shalt.err (!%p1178_p7)
}
  0x11   :  { %s1233_s19 = smov 128   ;;  %s1234_s20 = smov 8  }
  0x12   :  { %28 = dma.hbm_to_vmem [thread:$0]  %s1497_s0, 4096, %s23_s10, [#allocation3], %s1233_s19, %s1233_s19, %s1234_s20  }
  0x13   :  { %s1235_s23 = smov [#allocation5]   ;;  %s1182_s27 = scalar_lea.hbm %s1504_s7, 2048 }
  0x14   :  { %s46_s24 = sshll.u32 %s1235_s23, 4  ;;  %p1183_p8 = scmp.ne.s32.totalorder %s1504_s7, %s1182_s27  ;;  %s47_s24 = int_to_ptr.vmem [resolvable:$true] %s46_s24 }
  0x15   :  { %p1186_p9 = scmp.lt.u32.totalorder %s1182_s27, %s1504_s7 }
  0x17   :  { %p1188_p10 = pnand %p1186_p9, %p1183_p8 }
  0x19   :  { %1191 = shalt.err (!%p1188_p10)
}
  0x1a   :  { %s1192_s12 = scalar_lea.vmem %s47_s24, 2048  ;;  %p1197_p12 = scmp.lt.s32.totalorder %s47_s24, %s47_s24 }
  0x1b   :  { %p1193_p11 = scmp.ne.s32.totalorder %s47_s24, %s1192_s12  ;;  %p1198_p13 = scmp.lt.s32.totalorder %s1192_s12, %s1192_s12 }
  0x1d   :  { %p1199_p0 = por %p1198_p13, %p1197_p12 }
  0x1f   :  { %p1200_p1 = pnand %p1199_p0, %p1193_p11 }
  0x21   :  { %1203 = shalt.err (!%p1200_p1)
}
  0x22   :  { %52 = dma.hbm_to_vmem [thread:$0]  %s1504_s7, 2048, %s47_s24, [#allocation6], %s1233_s19, %s1233_s19, %s1234_s20  }
  0x23   :  { %1226 = dma.done.wait [#allocation3], 4096  }
  0x24   :  { %1227 = vsyncadd [#allocation3], 4294963200 }
  0x25   :  { %1228 = dma.done.wait [#allocation6], 2048  }
  0x26   :  { %1229 = vsyncadd [#allocation6], 4294965248  ;;  %vm98_vm0 = vcmask 293888   ;;  %v93_v0 = vld [vmem:[%s1499_s2] sm:$0xff]  ;;  %v94_v1 = vld [vmem:[%s1499_s2 + $0x8] sm:$0xff]  ;;  %vm195_vm1 = vcmask 1043456  }
  0x27   :  { %v95_v2 = vld [vmem:[%s1499_s2 + $0x10] sm:$0xff]  ;;  %v1105_v3 = vpack.c.bf16 %v94_v1, %v93_v0  ;;  %v96_v4 = vld [vmem:[%s1499_s2 + $0x18] sm:$0xff]  ;;  %v61_v5 = vld [vmem:[#allocation2] sm:$0xff]  ;;  %v1236_v42 = vmov 0.0|0.0   ;;  %vm1237_vm2 = vmmov 0   ;;  %v1238_v46 = vmov 0.0  }
  0x28   :  { %v1109_v6 = vpack.c.bf16 %v96_v4, %v95_v2  ;;  %1004 = vmatprep.mubr.msk.f32.mxu0 %vm98_vm0, %v61_v5  ;;  %v97_v7 = vld [vmem:[%s1499_s2 + $0x20] sm:$0xf]  ;;  %v87_v8 = vld [vmem:[#allocation2 + $0xd0] sm:$0xff]  ;;  %v62_v9 = vld [vmem:[#allocation2 + $0x8] sm:$0xff]  ;;  %vm495_vm3 = vcmask 261120   ;;  %vm615_vm4 = vcmask 1041409  }
  0x29   :  { %1106 = vmatprep.subr.bf16.mxu0 %v1105_v3  ;;  %1146 = vmatprep.subr.bf16.mxu1 %v1105_v3  ;;  %v88_v10 = vld [vmem:[#allocation2 + $0xd8] sm:$0xff]  ;;  %v63_v11 = vld [vmem:[#allocation2 + $0x10] sm:$0xff]  ;;  %v89_v12 = vld [vmem:[#allocation2 + $0xe0] sm:$0xff]  ;;  %vm617_vm5 = vcmask 1042434   ;;  %vm619_vm6 = vcmask 1043459   ;;  %vm621_vm7 = vcmask 1044484  }
  0x2a   :  { %1108 = vmatpush3.bf16.msra.mxu0 %v1105_v3  ;;  %1149 = vmatpush3.bf16.msra.mxu1 %v1105_v3  ;;  %v64_v13 = vld [vmem:[#allocation2 + $0x18] sm:$0xff]  ;;  %v90_v14 = vld [vmem:[#allocation2 + $0xe8] sm:$0xff]  ;;  %v65_v15 = vld [vmem:[#allocation2 + $0x20] sm:$0xff]  ;;  %vm623_vm8 = vcmask 1045509   ;;  %vm625_vm9 = vcmask 1046534   ;;  %vm627_vm10 = vcmask 1047559  }
  0x2b   :  { %1110 = vmatprep.subr.bf16.mxu0 %v1109_v6  ;;  %1147 = vmatprep.subr.bf16.mxu1 %v1109_v6  ;;  %v91_v16 = vld [vmem:[#allocation2 + $0xf0] sm:$0xff]  ;;  %v66_v17 = vld [vmem:[#allocation2 + $0x28] sm:$0xff]  ;;  %v92_v18 = vld [vmem:[#allocation2 + $0xf8] sm:$0xff]  ;;  %vm701_vm11 = vcmask 130048   ;;  %s1239_s15 = smov [#allocation7]  }
  0x2c   :  { %1043 = vmatprep.mubr.msk.f32.mxu1 %vm98_vm0, %v87_v8  ;;  %v67_v19 = vld [vmem:[#allocation2 + $0x30] sm:$0xff]  ;;  %v68_v20 = vld [vmem:[#allocation2 + $0x38] sm:$0xff]  ;;  %v69_v21 = vld [vmem:[#allocation2 + $0x40] sm:$0xff]  ;;  %s884_s16 = sshll.u32 %s1239_s15, 4  ;;  %s885_s16 = int_to_ptr.vmem [resolvable:$true] %s884_s16 }
  0x2d   :  { %v70_v22 = vld [vmem:[#allocation2 + $0x48] sm:$0xff]  ;;  %v71_v23 = vld [vmem:[#allocation2 + $0x50] sm:$0xff]  ;;  %v72_v24 = vld [vmem:[#allocation2 + $0x58] sm:$0xff]  ;;  %s1204_s17 = scalar_lea.vmem %s885_s16, 128  ;;  %p1209_p3 = scmp.lt.s32.totalorder %s885_s16, %s885_s16 }
  0x2e   :  { %1112 = vmatpush3.bf16.msra.mxu0 %v1109_v6  ;;  %1150 = vmatpush3.bf16.msra.mxu1 %v1109_v6  ;;  %v73_v25 = vld [vmem:[#allocation2 + $0x60] sm:$0xff]  ;;  %v74_v26 = vld [vmem:[#allocation2 + $0x68] sm:$0xff]  ;;  %v75_v27 = vld [vmem:[#allocation2 + $0x70] sm:$0xff]  ;;  %p1205_p2 = scmp.ne.s32.totalorder %s885_s16, %s1204_s17  ;;  %p1210_p4 = scmp.lt.s32.totalorder %s1204_s17, %s1204_s17 }
  0x2f   :  { %1002 = vmatprep.subr.msk.mxu0 %vm195_vm1, %v97_v7  ;;  %1148 = vmatprep.subr.msk.mxu1 %vm195_vm1, %v97_v7  ;;  %v76_v28 = vld [vmem:[#allocation2 + $0x78] sm:$0xff]  ;;  %v77_v29 = vld [vmem:[#allocation2 + $0x80] sm:$0xff]  ;;  %v78_v30 = vld [vmem:[#allocation2 + $0x88] sm:$0xff] }
  0x30   :  { %v79_v31 = vld [vmem:[#allocation2 + $0x90] sm:$0xff]  ;;  %v80_v32 = vld [vmem:[#allocation2 + $0x98] sm:$0xff]  ;;  %v81_v33 = vld [vmem:[#allocation2 + $0xa0] sm:$0xff]  ;;  %p1211_p5 = por %p1210_p4, %p1209_p3 }
  0x31   :  { %v82_v34 = vld [vmem:[#allocation2 + $0xa8] sm:$0xff]  ;;  %v83_v35 = vld [vmem:[#allocation2 + $0xb0] sm:$0xff]  ;;  %v84_v36 = vld [vmem:[#allocation2 + $0xb8] sm:$0xff] }
  0x32   :  { %1003 = vmatpush3.msk.msra.mxu0 %vm195_vm1, %v97_v7  ;;  %1151 = vmatpush3.msk.msra.mxu1 %vm195_vm1, %v97_v7  ;;  %v85_v37 = vld [vmem:[#allocation2 + $0xc0] sm:$0xff]  ;;  %v86_v38 = vld [vmem:[#allocation2 + $0xc8] sm:$0xff]  ;;  %v605_v43 = vld [vmem:[%s1502_s5 + $0x10] sm:$0xff]  ;;  %p1212_p6 = pnand %p1211_p5, %p1205_p2 }
  0x33   :  { %1005 = vmatmul.mubr.msk.f32.vlgmr.msra.gmra.mrb[0].mxu0 %vm98_vm0, %v62_v9  ;;  %1044 = vmatmul.mubr.msk.f32.vlgmr.msra.gmra.mrb[0].mxu1 %vm98_vm0, %v88_v10  ;;  %v603_v39 = vld [vmem:[%s1502_s5] sm:$0xff]  ;;  %v604_v40 = vld [vmem:[%s1502_s5 + $0x8] sm:$0xff]  ;;  %v606_v44 = vld [vmem:[%s1502_s5 + $0x18] sm:$0xff] }
  0x34   :  { %1007 = vmatprep.mubr.msk.f32.mxu0 %vm98_vm0, %v63_v11  ;;  %1046 = vmatprep.mubr.msk.f32.mxu1 %vm98_vm0, %v89_v12  ;;  %v1114_v41 = vpack.c.bf16 %v604_v40, %v603_v39  ;;  %v1117_v45 = vpack.c.bf16 %v606_v44, %v605_v43  ;;  %v1381_v47 = vld [vmem:[%s1500_s3] ss:$0 sm:$0xff] }
  0x35   :  { %1113 = vmatprep.subr.bf16.mxu1 %v1236_v42 }
  0x36   :  { %1115 = vmatpush3.bf16.msra.mxu1 %v1114_v41 }
  0x37   :  { %1008 = vmatmul.mubr.msk.f32.gmra.mrb[2].mxu0 %vm98_vm0, %v64_v13  ;;  %1047 = vmatmul.mubr.msk.f32.gmra.mrb[2].mxu1 %vm98_vm0, %v90_v14 }
  0x38   :  { %1010 = vmatprep.mubr.msk.f32.mxu0 %vm98_vm0, %v65_v15  ;;  %1049 = vmatprep.mubr.msk.f32.mxu1 %vm98_vm0, %v91_v16 }
  0x39   :  { %1116 = vmatprep.subr.bf16.mxu1 %v1236_v42 }
  0x3a   :  { %1118 = vmatpush3.bf16.msra.mxu1 %v1117_v45 }
  0x3b   :  { %1011 = vmatmul.mubr.msk.f32.gmra.mrb[4].mxu0 %vm98_vm0, %v66_v17  ;;  %1050 = vmatmul.mubr.msk.f32.gmra.mrb[4].mxu1 %vm98_vm0, %v92_v18 }
  0x3c   :  { %1013 = vmatprep.mubr.msk.f32.mxu0 %vm98_vm0, %v67_v19  ;;  %1060 = vmatprep.mubr.msk.f32.mxu1 %vm1237_vm2, %v1238_v46 }
  0x3d   :  { %1119 = vmatprep.subr.bf16.mxu1 %v1236_v42 }
  0x3f   :  { %1014 = vmatmul.mubr.msk.f32.gmra.mrb[6].mxu0 %vm98_vm0, %v68_v20 }
  0x40   :  { %1016 = vmatprep.mubr.msk.f32.mxu0 %vm98_vm0, %v69_v21 }
  0x43   :  { %1017 = vmatmul.mubr.msk.f32.gmra.mrb[8].mxu0 %vm98_vm0, %v70_v22 }
  0x44   :  { %1019 = vmatprep.mubr.msk.f32.mxu0 %vm98_vm0, %v71_v23 }
  0x47   :  { %1020 = vmatmul.mubr.msk.f32.gmra.mrb[10].mxu0 %vm98_vm0, %v72_v24 }
  0x48   :  { %1022 = vmatprep.mubr.msk.f32.mxu0 %vm98_vm0, %v73_v25 }
  0x4b   :  { %1023 = vmatmul.mubr.msk.f32.gmra.mrb[12].mxu0 %vm98_vm0, %v74_v26 }
  0x4c   :  { %1025 = vmatprep.mubr.msk.f32.mxu0 %vm98_vm0, %v75_v27 }
  0x4f   :  { %1026 = vmatmul.mubr.msk.f32.gmra.mrb[14].mxu0 %vm98_vm0, %v76_v28 }
  0x50   :  { %1028 = vmatprep.mubr.msk.f32.mxu0 %vm98_vm0, %v77_v29 }
  0x53   :  { %1029 = vmatmul.mubr.msk.f32.gmra.mrb[16].mxu0 %vm98_vm0, %v78_v30 }
  0x54   :  { %1031 = vmatprep.mubr.msk.f32.mxu0 %vm98_vm0, %v79_v31 }
  0x57   :  { %1032 = vmatmul.mubr.msk.f32.gmra.mrb[18].mxu0 %vm98_vm0, %v80_v32 }
  0x58   :  { %1034 = vmatprep.mubr.msk.f32.mxu0 %vm98_vm0, %v81_v33 }
  0x5b   :  { %1035 = vmatmul.mubr.msk.f32.gmra.mrb[20].mxu0 %vm98_vm0, %v82_v34 }
  0x5c   :  { %1037 = vmatprep.mubr.msk.f32.mxu0 %vm98_vm0, %v83_v35 }
  0x5f   :  { %1038 = vmatmul.mubr.msk.f32.gmra.mrb[22].mxu0 %vm98_vm0, %v84_v36 }
  0x60   :  { %1040 = vmatprep.mubr.msk.f32.mxu0 %vm98_vm0, %v85_v37 }
  0x63   :  { %1041 = vmatmul.mubr.msk.f32.gmra.mrb[24].mxu0 %vm98_vm0, %v86_v38 }
 0x106   :  { %v1006_v48 = vpop.f32.mrb[0].mxu0  ;;  %v1383_v49 = vpop.f32.mrb[0].mxu1 }
 0x107   :  { %v432_v50 = vadd.f32 %v1006_v48, %v1381_v47  ;;  %v265_v51 = vpop.f32.mrb[1].mxu0  ;;  %v1386_v52 = vpop.f32.mrb[1].mxu1 }
 0x108   :  { %v431_v53 = vadd.f32 %v1381_v47, %v265_v51 }
 0x109   :  { %v464_v54 = vmax.f32 %v432_v50, 0.0 }
 0x10a   :  { %v463_v55 = vmax.f32 %v431_v53, 0.0  ;;  %v1009_v56 = vpop.f32.mrb[2].mxu0  ;;  %v1048_v57 = vpop.f32.mrb[2].mxu1 }
 0x10b   :  { %v497_v58 = vsel %vm495_vm3, %v464_v54, -inf  ;;  %v434_v59 = vadd.f32 %v1009_v56, %v1381_v47  ;;  %v275_v60 = vpop.f32.mrb[3].mxu0  ;;  %v460_v61 = vadd.f32 %v1048_v57, %v1381_v47  ;;  %v405_v62 = vpop.f32.mrb[3].mxu1 }
 0x10c   :  { %v496_v63 = vsel %vm495_vm3, %v463_v55, -inf  ;;  %v433_v0 = vadd.f32 %v1381_v47, %v275_v60  ;;  %v459_v1 = vadd.f32 %v1381_v47, %v405_v62 }
 0x10d   :  { %v498_v2 = vmax.f32 %v496_v63, %v497_v58  ;;  %v492_v3 = vmax.f32 %v460_v61, 0.0  ;;  %v466_v4 = vmax.f32 %v434_v59, 0.0 }
 0x10e   :  { %v465_v5 = vmax.f32 %v433_v0, 0.0  ;;  %v1012_v6 = vpop.f32.mrb[4].mxu0  ;;  %v491_v7 = vmax.f32 %v459_v1, 0.0  ;;  %v1051_v8 = vpop.f32.mrb[4].mxu1 }
 0x10f   :  { %v436_v9 = vadd.f32 %v1012_v6, %v1381_v47  ;;  %v285_v10 = vpop.f32.mrb[5].mxu0  ;;  %v588_v11 = vsel %vm495_vm3, %v492_v3, -inf  ;;  %v462_v12 = vadd.f32 %v1051_v8, %v1381_v47  ;;  %v415_v13 = vpop.f32.mrb[5].mxu1  ;;  %v501_v22 = vsel %vm495_vm3, %v466_v4, -inf }
 0x110   :  { %v499_v14 = vsel %vm495_vm3, %v465_v5, -inf  ;;  %v435_v15 = vadd.f32 %v1381_v47, %v285_v10  ;;  %v587_v16 = vsel %vm495_vm3, %v491_v7, -inf  ;;  %v461_v17 = vadd.f32 %v1381_v47, %v415_v13 }
 0x111   :  { %v500_v18 = vmax.f32 %v498_v2, %v499_v14  ;;  %v468_v19 = vmax.f32 %v436_v9, 0.0  ;;  %v589_v20 = vmax.f32 %v587_v16, %v588_v11  ;;  %v494_v21 = vmax.f32 %v462_v12, 0.0 }
 0x112   :  { %v467_v23 = vmax.f32 %v435_v15, 0.0  ;;  %v1015_v24 = vpop.f32.mrb[6].mxu0  ;;  %v493_v25 = vmax.f32 %v461_v17, 0.0 }
 0x113   :  { %v502_v26 = vmax.f32 %v500_v18, %v501_v22  ;;  %v510_v27 = vsel %vm495_vm3, %v468_v19, -inf  ;;  %v438_v28 = vadd.f32 %v1015_v24, %v1381_v47  ;;  %v295_v29 = vpop.f32.mrb[7].mxu0  ;;  %v592_v32 = vsel %vm495_vm3, %v494_v21, -inf }
 0x114   :  { %v509_v30 = vsel %vm495_vm3, %v467_v23, -inf  ;;  %v437_v31 = vadd.f32 %v1381_v47, %v295_v29  ;;  %v590_v33 = vsel %vm495_vm3, %v493_v25, -inf }
 0x115   :  { %v503_v34 = vrot.slane %v502_v26, 4  ;;  %v511_v35 = vmax.f32 %v509_v30, %v510_v27  ;;  %v591_v36 = vmax.f32 %v589_v20, %v590_v33  ;;  %v470_v37 = vmax.f32 %v438_v28, 0.0 }
 0x116   :  { %v469_v38 = vmax.f32 %v437_v31, 0.0  ;;  %v1018_v39 = vpop.f32.mrb[8].mxu0 }
 0x117   :  { %v504_v40 = vmax.f32 %v502_v26, %v503_v34  ;;  %v440_v41 = vadd.f32 %v1018_v39, %v1381_v47  ;;  %v305_v43 = vpop.f32.mrb[9].mxu0  ;;  %v1410_v44 = vmax.f32 %v591_v36, %v592_v32  ;;  %v514_v54 = vsel %vm495_vm3, %v470_v37, -inf }
 0x118   :  { %v512_v45 = vsel %vm495_vm3, %v469_v38, -inf  ;;  %v439_v48 = vadd.f32 %v1381_v47, %v305_v43 }
 0x119   :  { %v513_v50 = vmax.f32 %v511_v35, %v512_v45  ;;  %v472_v51 = vmax.f32 %v440_v41, 0.0  ;;  %v505_v53 = vrot.slane %v504_v40, 2 }
 0x11a   :  { %v471_v55 = vmax.f32 %v439_v48, 0.0  ;;  %v1021_v56 = vpop.f32.mrb[10].mxu0 }
 0x11b   :  { %v515_v57 = vmax.f32 %v513_v50, %v514_v54  ;;  %v523_v58 = vsel %vm495_vm3, %v472_v51, -inf  ;;  %v442_v59 = vadd.f32 %v1021_v56, %v1381_v47  ;;  %v315_v60 = vpop.f32.mrb[11].mxu0  ;;  %v506_v1 = vmax.f32 %v504_v40, %v505_v53 }
 0x11c   :  { %v522_v61 = vsel %vm495_vm3, %v471_v55, -inf  ;;  %v441_v62 = vadd.f32 %v1381_v47, %v315_v60 }
 0x11d   :  { %v516_v63 = vrot.slane %v515_v57, 4  ;;  %v524_v0 = vmax.f32 %v522_v61, %v523_v58  ;;  %v474_v2 = vmax.f32 %v442_v59, 0.0  ;;  %v507_v13 = vrot.slane %v506_v1, 1 }
 0x11e   :  { %v473_v3 = vmax.f32 %v441_v62, 0.0  ;;  %v1024_v4 = vpop.f32.mrb[12].mxu0 }
 0x11f   :  { %v517_v5 = vmax.f32 %v515_v57, %v516_v63  ;;  %v444_v6 = vadd.f32 %v1024_v4, %v1381_v47  ;;  %v325_v7 = vpop.f32.mrb[13].mxu0  ;;  %v527_v14 = vsel %vm495_vm3, %v474_v2, -inf  ;;  %v508_v30 = vmax.f32 %v506_v1, %v507_v13 }
 0x120   :  { %v525_v8 = vsel %vm495_vm3, %v473_v3, -inf  ;;  %v443_v9 = vadd.f32 %v1381_v47, %v325_v7 }
 0x121   :  { %v518_v10 = vrot.slane %v517_v5, 2  ;;  %v526_v11 = vmax.f32 %v524_v0, %v525_v8  ;;  %v476_v12 = vmax.f32 %v444_v6, 0.0 }
 0x122   :  { %v475_v15 = vmax.f32 %v443_v9, 0.0  ;;  %v1027_v16 = vpop.f32.mrb[14].mxu0 }
 0x123   :  { %v519_v17 = vmax.f32 %v517_v5, %v518_v10  ;;  %v528_v18 = vmax.f32 %v526_v11, %v527_v14  ;;  %v536_v19 = vsel %vm495_vm3, %v476_v12, -inf  ;;  %v446_v20 = vadd.f32 %v1027_v16, %v1381_v47  ;;  %v335_v21 = vpop.f32.mrb[15].mxu0 }
 0x124   :  { %v535_v22 = vsel %vm495_vm3, %v475_v15, -inf  ;;  %v445_v23 = vadd.f32 %v1381_v47, %v335_v21 }
 0x125   :  { %v520_v24 = vrot.slane %v519_v17, 1  ;;  %v529_v25 = vrot.slane %v528_v18, 4  ;;  %v537_v26 = vmax.f32 %v535_v22, %v536_v19  ;;  %v478_v27 = vmax.f32 %v446_v20, 0.0 }
 0x126   :  { %v477_v28 = vmax.f32 %v445_v23, 0.0  ;;  %v1030_v29 = vpop.f32.mrb[16].mxu0  ;;  %v457_v22 = vadd.f32 %v1381_v47, %v1386_v52 }
 0x127   :  { %v521_v31 = vmax.f32 %v519_v17, %v520_v24  ;;  %v530_v32 = vmax.f32 %v528_v18, %v529_v25  ;;  %v448_v33 = vadd.f32 %v1030_v29, %v1381_v47  ;;  %v345_v34 = vpop.f32.mrb[17].mxu0  ;;  %v540_v41 = vsel %vm495_vm3, %v478_v27, -inf }
 0x128   :  { %v538_v35 = vsel %vm495_vm3, %v477_v28, -inf  ;;  %v447_v36 = vadd.f32 %v1381_v47, %v345_v34  ;;  %v489_v52 = vmax.f32 %v457_v22, 0.0  ;;  %v788_v22 = vld [vmem:[#allocation5 + $0x20] sm:$0xff] }
 0x129   :  { %v616_v37 = vsel %vm615_vm4, %v521_v31, %v508_v30  ;;  %v531_v38 = vrot.slane %v530_v32, 2  ;;  %v539_v39 = vmax.f32 %v537_v26, %v538_v35  ;;  %v480_v40 = vmax.f32 %v448_v33, 0.0 }
 0x12a   :  { %v479_v43 = vmax.f32 %v447_v36, 0.0  ;;  %v1033_v45 = vpop.f32.mrb[18].mxu0  ;;  %v458_v30 = vadd.f32 %v1383_v49, %v1381_v47 }
 0x12b   :  { %v532_v48 = vmax.f32 %v530_v32, %v531_v38  ;;  %v541_v50 = vmax.f32 %v539_v39, %v540_v41  ;;  %v549_v51 = vsel %vm495_vm3, %v480_v40, -inf  ;;  %v450_v53 = vadd.f32 %v1033_v45, %v1381_v47  ;;  %v355_v54 = vpop.f32.mrb[19].mxu0 }
 0x12c   :  { %v548_v55 = vsel %vm495_vm3, %v479_v43, -inf  ;;  %v449_v56 = vadd.f32 %v1381_v47, %v355_v54  ;;  %v490_v45 = vmax.f32 %v458_v30, 0.0 }
 0x12d   :  { %v533_v57 = vrot.slane %v532_v48, 1  ;;  %v542_v58 = vrot.slane %v541_v50, 4  ;;  %v550_v59 = vmax.f32 %v548_v55, %v549_v51  ;;  %v482_v60 = vmax.f32 %v450_v53, 0.0 }
 0x12e   :  { %v481_v61 = vmax.f32 %v449_v56, 0.0  ;;  %v1036_v62 = vpop.f32.mrb[20].mxu0  ;;  %v577_v51 = vsel %vm495_vm3, %v489_v52, -inf  ;;  %v799_v52 = vld [vmem:[#allocation5 + $0x78] sm:$0xff] }
 0x12f   :  { %v534_v63 = vmax.f32 %v532_v48, %v533_v57  ;;  %v543_v0 = vmax.f32 %v541_v50, %v542_v58  ;;  %v452_v1 = vadd.f32 %v1036_v62, %v1381_v47  ;;  %v365_v2 = vpop.f32.mrb[21].mxu0  ;;  %v553_v9 = vsel %vm495_vm3, %v482_v60, -inf }
 0x130   :  { %v551_v3 = vsel %vm495_vm3, %v481_v61, -inf  ;;  %v451_v4 = vadd.f32 %v1381_v47, %v365_v2  ;;  %v579_v57 = vsel %vm495_vm3, %v490_v45, -inf }
 0x131   :  { %v618_v5 = vsel %vm617_vm5, %v534_v63, %v616_v37  ;;  %v544_v6 = vrot.slane %v543_v0, 2  ;;  %v552_v7 = vmax.f32 %v550_v59, %v551_v3  ;;  %v484_v8 = vmax.f32 %v452_v1, 0.0 }
 0x132   :  { %v483_v10 = vmax.f32 %v451_v4, 0.0  ;;  %v1039_v11 = vpop.f32.mrb[22].mxu0  ;;  %v594_v37 = vrot.slane %v1410_v44, 4 }
 0x133   :  { %v545_v12 = vmax.f32 %v543_v0, %v544_v6  ;;  %v554_v13 = vmax.f32 %v552_v7, %v553_v9  ;;  %v562_v14 = vsel %vm495_vm3, %v484_v8, -inf  ;;  %v454_v15 = vadd.f32 %v1039_v11, %v1381_v47  ;;  %v375_v16 = vpop.f32.mrb[23].mxu0  ;;  %v601_v8 = vld [vmem:[%s1501_s4] sm:$0xff]  ;;  %v602_v9 = vld [vmem:[%s1501_s4 + $0x8] sm:$0xff] }
 0x134   :  { %v561_v17 = vsel %vm495_vm3, %v483_v10, -inf  ;;  %v453_v18 = vadd.f32 %v1381_v47, %v375_v16  ;;  %v595_v53 = vmax.f32 %v1410_v44, %v594_v37 }
 0x135   :  { %v546_v19 = vrot.slane %v545_v12, 1  ;;  %v555_v20 = vrot.slane %v554_v13, 4  ;;  %v563_v21 = vmax.f32 %v561_v17, %v562_v14  ;;  %v486_v23 = vmax.f32 %v454_v15, 0.0  ;;  %v784_v14 = vld [vmem:[#allocation5] sm:$0xff]  ;;  %v785_v15 = vld [vmem:[#allocation5 + $0x8] sm:$0xff] }
 0x136   :  { %v485_v24 = vmax.f32 %v453_v18, 0.0  ;;  %v1042_v25 = vpop.f32.mrb[24].mxu0  ;;  %v596_v61 = vrot.slane %v595_v53, 2  ;;  %v600_v17 = vld [vmem:[%s1498_s1] sm:$0xff]  ;;  %v1123_v18 = vpack.c.bf16 %v785_v15, %v784_v14 }
 0x137   :  { %v547_v26 = vmax.f32 %v545_v12, %v546_v19  ;;  %v556_v27 = vmax.f32 %v554_v13, %v555_v20  ;;  %v456_v28 = vadd.f32 %v1042_v25, %v1381_v47  ;;  %v385_v29 = vpop.f32.mrb[25].mxu0  ;;  %v566_v38 = vsel %vm495_vm3, %v486_v23, -inf  ;;  %v786_v19 = vld [vmem:[#allocation5 + $0x10] sm:$0xff]  ;;  %v787_v20 = vld [vmem:[#allocation5 + $0x18] sm:$0xff]  ;;  %v789_v23 = vld [vmem:[#allocation5 + $0x28] sm:$0xff] }
 0x138   :  { %v564_v31 = vsel %vm495_vm3, %v485_v24, -inf  ;;  %v455_v32 = vadd.f32 %v1381_v47, %v385_v29  ;;  %v597_v2 = vmax.f32 %v595_v53, %v596_v61  ;;  %v1120_v12 = vpack.c.bf16 %v602_v9, %v601_v8  ;;  %v790_v25 = vld [vmem:[#allocation5 + $0x30] sm:$0xff]  ;;  %v793_v29 = vld [vmem:[#allocation5 + $0x48] sm:$0xff] }
 0x139   :  { %v620_v33 = vsel %vm619_vm6, %v547_v26, %v618_v5  ;;  %v557_v34 = vrot.slane %v556_v27, 2  ;;  %v565_v35 = vmax.f32 %v563_v21, %v564_v31  ;;  %v488_v36 = vmax.f32 %v456_v28, 0.0  ;;  %v791_v26 = vld [vmem:[#allocation5 + $0x38] sm:$0xff]  ;;  %v792_v28 = vld [vmem:[#allocation5 + $0x40] sm:$0xff] }
 0x13a   :  { %v487_v39 = vmax.f32 %v455_v32, 0.0  ;;  %v598_v6 = vrot.slane %v597_v2, 1  ;;  %v1126_v21 = vpack.c.bf16 %v787_v20, %v786_v19  ;;  %v1129_v24 = vpack.c.bf16 %v789_v23, %v788_v22  ;;  %v795_v31 = vld [vmem:[#allocation5 + $0x58] sm:$0xff] }
 0x13b   :  { %v558_v40 = vmax.f32 %v556_v27, %v557_v34  ;;  %v567_v41 = vmax.f32 %v565_v35, %v566_v38  ;;  %v575_v43 = vsel %vm495_vm3, %v488_v36, -inf  ;;  %v1132_v27 = vpack.c.bf16 %v791_v26, %v790_v25  ;;  %v797_v34 = vld [vmem:[#allocation5 + $0x68] sm:$0xff]  ;;  %v798_v36 = vld [vmem:[#allocation5 + $0x70] sm:$0xff] }
 0x13c   :  { %v574_v49 = vsel %vm495_vm3, %v487_v39, -inf  ;;  %v599_v11 = vmax.f32 %v597_v2, %v598_v6  ;;  %v1135_v30 = vpack.c.bf16 %v793_v29, %v792_v28  ;;  %v1144_v37 = vpack.c.bf16 %v799_v52, %v798_v36 }
 0x13d   :  { %v559_v48 = vrot.slane %v558_v40, 1  ;;  %v568_v50 = vrot.slane %v567_v41, 4  ;;  %v576_v47 = vmax.f32 %v574_v49, %v575_v43 }
 0x13f   :  { %v560_v54 = vmax.f32 %v558_v40, %v559_v48  ;;  %v569_v55 = vmax.f32 %v567_v41, %v568_v50  ;;  %v578_v56 = vmax.f32 %v576_v47, %v577_v51  ;;  %v930_v41 = vld [vmem:[%s1503_s6] ss:$0 sm:$0xff] }
 0x141   :  { %v570_v58 = vrot.slane %v569_v55, 2  ;;  %v580_v59 = vmax.f32 %v578_v56, %v579_v57  ;;  %v622_v60 = vsel %vm621_vm7, %v560_v54, %v620_v33  ;;  %v796_v33 = vld [vmem:[#allocation5 + $0x60] sm:$0xff] }
 0x142   :  { %v1141_v35 = vpack.c.bf16 %v797_v34, %v796_v33 }
 0x143   :  { %v571_v62 = vmax.f32 %v569_v55, %v570_v58  ;;  %v581_v63 = vrot.slane %v580_v59, 4 }
 0x145   :  { %v572_v0 = vrot.slane %v571_v62, 1  ;;  %v582_v1 = vmax.f32 %v580_v59, %v581_v63 }
 0x147   :  { %v573_v3 = vmax.f32 %v571_v62, %v572_v0  ;;  %v583_v4 = vrot.slane %v582_v1, 2 }
 0x149   :  { %v584_v5 = vmax.f32 %v582_v1, %v583_v4  ;;  %v624_v44 = vsel %vm623_vm8, %v573_v3, %v622_v60 }
 0x14b   :  { %v585_v7 = vrot.slane %v584_v5, 1 }
 0x14d   :  { %v586_v10 = vmax.f32 %v584_v5, %v585_v7 }
 0x14f   :  { %v626_v13 = vsel %vm625_vm9, %v586_v10, %v624_v44 }
 0x150   :  { %v628_v16 = vsel %vm627_vm10, %v599_v11, %v626_v13 }
 0x151   :  { %1061 = vmatmul.mubr.msk.f32.vlgmr.msra.gmra.mrb[6].mxu1 %vm495_vm3, %v628_v16 }
 0x152   :  { %1121 = vmatpush3.bf16.msra.mxu1 %v1120_v12  ;;  %1067 = vmatprep.mubr.msk.f32.mxu1 %vm1237_vm2, %v1238_v46 }
 0x153   :  { %1122 = vmatprep.subr.bf16.mxu1 %v1236_v42 }
 0x155   :  { %1068 = vmatmul.mubr.msk.f32.vlgmr.msra.gmra.mrb[8].mxu1 %vm701_vm11, %v600_v17 }
 0x156   :  { %1124 = vmatpush3.bf16.msra.mxu1 %v1123_v18  ;;  %1102 = vmatprep.mubr.msk.f32.mxu1 %vm1237_vm2, %v1238_v46  ;;  %v794_v46 = vld [vmem:[#allocation5 + $0x50] sm:$0xff] }
 0x157   :  { %1125 = vmatprep.subr.bf16.mxu1 %v1236_v42  ;;  %v1138_v32 = vpack.c.bf16 %v795_v31, %v794_v46 }
 0x15a   :  { %1127 = vmatpush3.bf16.msra.mxu1 %v1126_v21 }
 0x15b   :  { %1128 = vmatprep.subr.bf16.mxu1 %v1236_v42 }
 0x15e   :  { %1130 = vmatpush3.bf16.msra.mxu1 %v1129_v24 }
 0x15f   :  { %1131 = vmatprep.subr.bf16.mxu1 %v1236_v42 }
 0x162   :  { %1133 = vmatpush3.bf16.msra.mxu1 %v1132_v27 }
 0x163   :  { %1134 = vmatprep.subr.bf16.mxu1 %v1236_v42 }
 0x166   :  { %1136 = vmatpush3.bf16.msra.mxu1 %v1135_v30 }
 0x167   :  { %1137 = vmatprep.subr.bf16.mxu1 %v1236_v42 }
 0x16a   :  { %1139 = vmatpush3.bf16.msra.mxu1 %v1138_v32 }
 0x16b   :  { %1140 = vmatprep.subr.bf16.mxu1 %v1236_v42 }
 0x16e   :  { %1142 = vmatpush3.bf16.msra.mxu1 %v1141_v35 }
 0x16f   :  { %1143 = vmatprep.subr.bf16.mxu1 %v1236_v42  ;;  %v931_v42 = vld [vmem:[%s1505_s8] ss:$0 sm:$0xff] }
 0x172   :  { %1145 = vmatpush3.bf16.msra.mxu1 %v1144_v37 }
 0x224   :  { %v697_v38 = vpop.f32.mrb[6].mxu1 }
 0x225   :  { %v1062_v39 = vpop.f32.mrb[7].mxu1 }
 0x228   :  { %v771_v40 = vpop.f32.mrb[8].mxu1 }
 0x229   :  { %v772_v43 = vadd.f32 %v771_v40, %v697_v38  ;;  %v1069_v45 = vpop.f32.mrb[9].mxu1 }
 0x22b   :  { %v782_v49 = vadd.f32 %v930_v41, %v772_v43 }
 0x22d   :  { %v783_v48 = vmax.f32 %v782_v49, 0.0 }
 0x22f   :  { %1103 = vmatmul.mubr.f32.vlgmr.msra.gmra.mrb[10].mxu1 %v783_v48 }
 0x302   :  { %v873_v50 = vpop.f32.mrb[10].mxu1 }
 0x303   :  { %v874_v47 = vadd.f32 %v931_v42, %v873_v50  ;;  %v1104_v51 = vpop.f32.mrb[11].mxu1 }
 0x305   :  { %877 = vst [vmem:[#allocation7] sm:$0xff] %v874_v47 }
 0x306   :  { %1215 = shalt.err (!%p1212_p6)
}
 0x307   :  { %s1216_s21 = scalar_lea.hbm %s1506_s9, 128 }
 0x308   :  { %p1217_p7 = scmp.ne.s32.totalorder %s1506_s9, %s1216_s21  ;;  %p1220_p8 = scmp.lt.u32.totalorder %s1216_s21, %s1506_s9 }
 0x30a   :  { %p1222_p9 = pnand %p1220_p8, %p1217_p7 }
 0x30c   :  { %1225 = shalt.err (!%p1222_p9)
}
 0x30d   :  { %887 = dma.vmem_to_hbm [thread:$0]  %s885_s16, 128, %s1506_s9, [#allocation4]  }
 0x30e   :  { %1230 = dma.done.wait [#allocation4], 128  }
 0x30f   :  { %1231 = vsyncadd [#allocation4], 4294967168 }
 0x310   :  { %891 = vsyncpa [#allocation3], 1 }
 0x311   :  { %892 = vsyncpa [#allocation6], 1 }
 0x312   :  { %893 = vsyncpa [#allocation4], 1 }

</bundles_post_ra>
